<compile_context>
chip_gen: v5e
topology: v5e:2x2
jax: 0.10.0
libtpu: 0.0.40
codegen_flags: <defaults>
</compile_context>

<pallas_src>
import math
import numpy as np
import jax
import jax.numpy as jnp
from jax.experimental import pallas as pl
from jax.experimental.pallas import tpu as pltpu


_C1 = 0.01 ** 2
_C2 = 0.03 ** 2


# ----------------------------------------------------------------------------
# Static helpers (compile-time)
# ----------------------------------------------------------------------------
def _gaussian_window_weights(kernel_size, sigma=1.5):
    xs = np.arange(kernel_size, dtype=np.float64)
    g = np.exp(-((xs - kernel_size // 2) ** 2) / (2.0 * sigma ** 2))
    g = g / g.sum()
    w2d = np.outer(g, g).astype(np.float32)        # (K, K), sums to 1
    return [float(v) for v in w2d.reshape(-1)]     # baked scalar immediates


def _num_core_splits():
    # 2-way "parallel" split only where there are 2 TensorCores per chip (v7x);
    # on single-TC chips (v5e/v6e) a parallel axis just serializes, inflates
    # padding and robs the inner axis of pipelined steps.
    try:
        kind = jax.devices()[0].device_kind.lower()
    except Exception:
        return 1
    return 2 if "v7" in kind else 1


def _choose_tiling(num_out_pixels, channels, num_splits):
    """Pick (tile_rows, rows_padded, n_inner) for the (16, rows, 128) layout.

    rows_padded must be a multiple of tile_rows*num_splits (whole blocks) and
    of channels/gcd(channels,128) so (16, op_pad, C) -> (16, rows, 128) is a
    free reshape.  Prefer >=3 inner steps (DMA/compute overlap), then minimal
    padding, then the largest tile (fewest ~0.35us grid steps).
    """
    c1 = channels // math.gcd(channels, 128)
    total_rows = -(-num_out_pixels * channels // 128)
    best = None
    for tr in (8, 16, 24, 32):                      # multiples of 8, capped at 32
        step_rows = tr * num_splits
        r = step_rows * c1 // math.gcd(step_rows, c1)   # lcm(step_rows, c1)
        rows_padded = -(-total_rows // r) * r
        n_inner = rows_padded // step_rows
        key = (n_inner < 3, rows_padded, -tr)
        if best is None or key < best[0]:
            best = (key, tr, rows_padded, n_inner)
    return best[1], best[2], best[3]


def _build_tap_pixel_map(H, Wt, kernel_size, stride, pad, op_pad):
    """Static (K*K, op_pad) int32 map: (tap, conv-output pixel) -> image pixel.

    Sentinel H*Wt marks conv zero-padding taps and tail padding columns; it is
    routed to an all-zero extra row so padded lanes produce ssim == 1.0 exactly.
    """
    K = kernel_size
    OH = (H + 2 * pad - K) // stride + 1
    OW = (Wt + 2 * pad - K) // stride + 1
    ki, kj, oh, ow = np.meshgrid(np.arange(K), np.arange(K),
                                 np.arange(OH), np.arange(OW), indexing="ij")
    r = oh * stride + ki - pad
    q = ow * stride + kj - pad
    valid = (r >= 0) & (r < H) & (q >= 0) & (q < Wt)
    pix = np.where(valid, r * Wt + q, H * Wt).astype(np.int32)
    pix = pix.reshape(K * K, OH * OW)
    out = np.full((K * K, op_pad), H * Wt, np.int32)
    out[:, :OH * OW] = pix
    return out


def _make_res_index(key, n_rays, repeat_time):
    # Block 0 identity; blocks 1..repeat_time-1 random permutations.
    # TODO(synk): torch.randperm cannot be reproduced bit-identically;
    # jax.random.permutation keeps the semantics (random reshuffles) deterministically.
    blocks = [jnp.arange(n_rays, dtype=jnp.int32)]
    if repeat_time > 1:
        keys = jax.random.split(key, repeat_time - 1)
        for i in range(repeat_time - 1):
            blocks.append(jax.random.permutation(keys[i], n_rays).astype(jnp.int32))
    return jnp.concatenate(blocks)


# ----------------------------------------------------------------------------
# Pallas kernel
# ----------------------------------------------------------------------------
def _make_s3im_kernel(weights):
    n_taps = len(weights)   # K*K = 16

    def kernel(p1_ref, p2_ref, out_ref):
        # p1/p2: (K*K, tile_rows, 128) f32 patch tiles, 16-tap window axis LEADING.
        # out  : (1, 1, 128)           f32 per-split running lane-sum of ssim_map.
        j = pl.program_id(1)

        @pl.when(j == 0)
        def _init():
            out_ref[...] = jnp.zeros_like(out_ref)

        # 16-tap weighted moments over the leading axis: dense (tile_rows,128)
        # vregs, plain VPU adds, scalar-immediate weights; wp1/wp2 reused so
        # there are 5 multiplies per tap instead of 8.
        p1 = p1_ref[0]
        p2 = p2_ref[0]
        wp1 = p1 * weights[0]
        wp2 = p2 * weights[0]
        mu1 = wp1
        mu2 = wp2
        e11 = wp1 * p1
        e22 = wp2 * p2
        e12 = wp1 * p2
        for k in range(1, n_taps):
            p1 = p1_ref[k]
            p2 = p2_ref[k]
            wp1 = p1 * weights[k]
            wp2 = p2 * weights[k]
            mu1 = mu1 + wp1
            mu2 = mu2 + wp2
            e11 = e11 + wp1 * p1
            e22 = e22 + wp2 * p2
            e12 = e12 + wp1 * p2

        mu1_sq = mu1 * mu1
        mu2_sq = mu2 * mu2
        mu1_mu2 = mu1 * mu2
        sigma1_sq = e11 - mu1_sq
        sigma2_sq = e22 - mu2_sq
        sigma12 = e12 - mu1_mu2

        # Exact divide on purpose: lanes where both inputs are all-zero padding
        # must evaluate to exactly 1.0 so the padded-lane count can be
        # subtracted outside.  Do NOT swap in an approx reciprocal here.
        ssim_map = ((2.0 * mu1_mu2 + _C1) * (2.0 * sigma12 + _C2)) / (
            (mu1_sq + mu2_sq + _C1) * (sigma1_sq + sigma2_sq + _C2))

        # Sublane (XLU) reduce to a lane-dense (1,128) partial sum per split.
        out_ref[0] = out_ref[0] + jnp.sum(ssim_map, axis=0, keepdims=True)

    return kernel


def _ssim_partial_sums(src_t, tar_t, weights, tile_rows, num_splits, n_inner):
    kk = src_t.shape[0]
    kernel = _make_s3im_kernel(weights)
    in_map = lambda i, j: (0, i * n_inner + j, 0)

    return pl.pallas_call(
        kernel,
        out_shape=jax.ShapeDtypeStruct((num_splits, 1, 128), jnp.float32),
        grid_spec=pltpu.PrefetchScalarGridSpec(
            num_scalar_prefetch=0,
            grid=(num_splits, n_inner),
            in_specs=[
                pl.BlockSpec((kk, tile_rows, 128), in_map),
                pl.BlockSpec((kk, tile_rows, 128), in_map),
            ],
            out_specs=pl.BlockSpec((1, 1, 128), lambda i, j: (i, 0, 0)),
        ),
        compiler_params=pltpu.CompilerParams(
            dimension_semantics=("parallel", "arbitrary"),
            vmem_limit_bytes=32 * 1024 * 1024,
        ),
    )(src_t, tar_t)


# ----------------------------------------------------------------------------
# Forward pass
# ----------------------------------------------------------------------------
def s3im_forward(key, src_vec, tar_vec, patch_height=64, patch_width=64,
                 kernel_size=4, stride=4, repeat_time=10):
    N, C = src_vec.shape
    assert N == patch_height * patch_width
    assert stride == kernel_size, "non-overlapping windows assumed (module default)"

    H = patch_height
    Wt = patch_width * repeat_time
    n_pix = H * Wt
    pad = (kernel_size - 1) // 2
    OH = (H + 2 * pad - kernel_size) // stride + 1
    OW = (Wt + 2 * pad - kernel_size) // stride + 1
    P = OH * OW * C                                   # true SSIM-map element count

    num_splits = _num_core_splits()
    tile_rows, rows_padded, n_inner = _choose_tiling(OH * OW, C, num_splits)
    op_pad = rows_padded * 128 // C                   # padded conv-output pixels

    # Compose the static im2col map with the dynamic permutation in INDEX space
    # (cheap), then one row-gather per input writes the (K*K, rows_padded, 128)
    # kernel layout directly.  No transpose / pad copies.
    tap_pix = jnp.asarray(
        _build_tap_pixel_map(H, Wt, kernel_size, stride, pad, op_pad))
    res_index = _make_res_index(key, N, repeat_time)            # (n_pix,) int32
    assert res_index.shape[0] == n_pix
    res_ext = jnp.concatenate([res_index, jnp.full((1,), N, jnp.int32)])
    combined = res_ext[tap_pix]                                  # (K*K, op_pad)

    def to_tiles(v):
        v_ext = jnp.concatenate(
            [v.astype(jnp.float32), jnp.zeros((1, C), jnp.float32)], axis=0)
        patches = v_ext[combined]                                # (K*K, op_pad, C)
        # op_pad*C == rows_padded*128 by construction -> free reshape.
        return patches.reshape(kernel_size * kernel_size, rows_padded, 128)

    src_t = to_tiles(src_vec)
    tar_t = to_tiles(tar_vec)

    weights = _gaussian_window_weights(kernel_size)
    partial = _ssim_partial_sums(src_t, tar_t, weights,
                                 tile_rows, num_splits, n_inner)

    # Zero-padded lanes (both inputs exactly 0) contribute exactly 1.0 each.
    n_pad_lanes = rows_padded * 128 - P
    ssim_mean = (jnp.sum(partial) - float(n_pad_lanes)) / float(P)
    return (1.0 - ssim_mean).astype(jnp.float32)


# ----------------------------------------------------------------------------
# Pure-JAX reference (independent path) for validation
# ----------------------------------------------------------------------------
def _extract_patches_channels_last(img_hwc, kernel_size, stride, pad):
    assert stride == kernel_size
    H, W, C = img_hwc.shape
    K = kernel_size
    OH = (H + 2 * pad - K) // stride + 1
    OW = (W + 2 * pad - K) // stride + 1
    x = jnp.pad(img_hwc, ((pad, pad), (pad, pad), (0, 0)))
    x = x[: K * OH, : K * OW, :]
    x = x.reshape(OH, K, OW, K, C).transpose(1, 3, 0, 2, 4)
    return x.reshape(K * K, OH * OW * C).astype(jnp.float32)


def _s3im_reference(key, src_vec, tar_vec, patch_height=64, patch_width=64,
                    kernel_size=4, stride=4, repeat_time=10):
    N, C = src_vec.shape
    H = patch_height
    Wt = patch_width * repeat_time
    res_index = _make_res_index(key, N, repeat_time)
    src_img = src_vec[res_index].reshape(H, Wt, C).astype(jnp.float32)
    tar_img = tar_vec[res_index].reshape(H, Wt, C).astype(jnp.float32)
    pad = (kernel_size - 1) // 2
    sp = _extract_patches_channels_last(src_img, kernel_size, stride, pad)
    tp = _extract_patches_channels_last(tar_img, kernel_size, stride, pad)
    w = jnp.asarray(_gaussian_window_weights(kernel_size), jnp.float32)[:, None]
    mu1 = jnp.sum(sp * w, axis=0)
    mu2 = jnp.sum(tp * w, axis=0)
    e11 = jnp.sum(sp * sp * w, axis=0)
    e22 = jnp.sum(tp * tp * w, axis=0)
    e12 = jnp.sum(sp * tp * w, axis=0)
    mu1_sq, mu2_sq, mu1_mu2 = mu1 * mu1, mu2 * mu2, mu1 * mu2
    s1, s2, s12 = e11 - mu1_sq, e22 - mu2_sq, e12 - mu1_mu2
    ssim_map = ((2.0 * mu1_mu2 + _C1) * (2.0 * s12 + _C2)) / (
        (mu1_sq + mu2_sq + _C1) * (s1 + s2 + _C2))
    return 1.0 - jnp.mean(ssim_map)


# ----------------------------------------------------------------------------
if __name__ == "__main__":
    key = jax.random.PRNGKey(0)
    k_src, k_tar, k_perm = jax.random.split(key, 3)

    # Small shapes consistent with the module: ray vectors of shape (N, C)
    # with N = patch_height * patch_width.
    patch_height, patch_width, channels = 16, 16, 3
    n_rays = patch_height * patch_width
    src_vec = jax.random.uniform(k_src, (n_rays, channels), dtype=jnp.float32)
    tar_vec = jax.random.uniform(k_tar, (n_rays, channels), dtype=jnp.float32)

    fwd = jax.jit(lambda k, s, t: s3im_forward(
        k, s, t, patch_height=patch_height, patch_width=patch_width,
        kernel_size=4, stride=4, repeat_time=10))
    loss = fwd(k_perm, src_vec, tar_vec)
    jax.block_until_ready(loss)

    ref = _s3im_reference(k_perm, src_vec, tar_vec,
                          patch_height=patch_height, patch_width=patch_width,
                          kernel_size=4, stride=4, repeat_time=10)
    assert loss.shape == () and loss.dtype == jnp.float32
    assert abs(float(loss) - float(ref)) < 5e-4, (float(loss), float(ref))
    print("KERNEL_OK")
</pallas_src>

<mosaic_0001>
module attributes {stable_mosaic.version = 11 : i64} {
  func.func @kernel(%arg0: i32, %arg1: i32, %arg2: memref<16x8x128xf32, #tpu.memory_space<vmem>>, %arg3: memref<16x8x128xf32, #tpu.memory_space<vmem>>, %arg4: memref<1x1x128xf32, #tpu.memory_space<vmem>>) attributes {dimension_semantics = [#tpu.dimension_semantics<parallel>, #tpu.dimension_semantics<arbitrary>], iteration_bounds = array<i64: 1, 3>, scalar_prefetch = 0 : i64, scratch_operands = 0 : i64, tpu.core_type = #tpu.core_type<tc>, window_params = [{transform_indices = @transform_0, window_bounds = array<i64: 16, 8, 128>}, {transform_indices = @transform_1, window_bounds = array<i64: 16, 8, 128>}, {transform_indices = @transform_2, window_bounds = array<i64: 1, 1, 128>}]} {
    %c0_i32 = arith.constant 0 : i32
    %0 = arith.cmpi eq, %arg1, %c0_i32 : i32
    %1 = arith.extui %0 : i1 to i32
    %c0_i32_0 = arith.constant 0 : i32
    %2 = arith.cmpi ne, %1, %c0_i32_0 : i32
    scf.if %2 {
      %cst_125 = arith.constant 0.000000e+00 : f32
      %285 = vector.broadcast %cst_125 : f32 to vector<1x1x128xf32>
      %c0_126 = arith.constant 0 : index
      %c0_127 = arith.constant 0 : index
      %c0_128 = arith.constant 0 : index
      %286 = vector.load %arg4[%c0_126, %c0_127, %c0_128] : memref<1x1x128xf32, #tpu.memory_space<vmem>>, vector<1x1x128xf32>
      tpu.vector_store %arg4[%c0_126, %c0_127, %c0_128], %285 {strides = array<i32>} : memref<1x1x128xf32, #tpu.memory_space<vmem>>, vector<1x1x128xf32>,
    } else {
    }
    %c0 = arith.constant 0 : index
    %c0_1 = arith.constant 0 : index
    %c0_2 = arith.constant 0 : index
    %3 = vector.load %arg2[%c0, %c0_1, %c0_2] : memref<16x8x128xf32, #tpu.memory_space<vmem>>, vector<1x8x128xf32>
    %4 = vector.shape_cast %3 : vector<1x8x128xf32> to vector<8x128xf32>
    %c0_3 = arith.constant 0 : index
    %c0_4 = arith.constant 0 : index
    %c0_5 = arith.constant 0 : index
    %5 = vector.load %arg3[%c0_3, %c0_4, %c0_5] : memref<16x8x128xf32, #tpu.memory_space<vmem>>, vector<1x8x128xf32>
    %6 = vector.shape_cast %5 : vector<1x8x128xf32> to vector<8x128xf32>
    %cst = arith.constant 0.0186226591 : f32
    %7 = vector.broadcast %cst : f32 to vector<8x128xf32>
    %8 = arith.mulf %4, %7 : vector<8x128xf32>
    %cst_6 = arith.constant 0.0186226591 : f32
    %9 = vector.broadcast %cst_6 : f32 to vector<8x128xf32>
    %10 = arith.mulf %6, %9 : vector<8x128xf32>
    %11 = arith.mulf %8, %4 : vector<8x128xf32>
    %12 = arith.mulf %10, %6 : vector<8x128xf32>
    %13 = arith.mulf %8, %6 : vector<8x128xf32>
    %c1 = arith.constant 1 : index
    %c0_7 = arith.constant 0 : index
    %c0_8 = arith.constant 0 : index
    %14 = vector.load %arg2[%c1, %c0_7, %c0_8] : memref<16x8x128xf32, #tpu.memory_space<vmem>>, vector<1x8x128xf32>
    %15 = vector.shape_cast %14 : vector<1x8x128xf32> to vector<8x128xf32>
    %c1_9 = arith.constant 1 : index
    %c0_10 = arith.constant 0 : index
    %c0_11 = arith.constant 0 : index
    %16 = vector.load %arg3[%c1_9, %c0_10, %c0_11] : memref<16x8x128xf32, #tpu.memory_space<vmem>>, vector<1x8x128xf32>
    %17 = vector.shape_cast %16 : vector<1x8x128xf32> to vector<8x128xf32>
    %cst_12 = arith.constant 0.0362719856 : f32
    %18 = vector.broadcast %cst_12 : f32 to vector<8x128xf32>
    %19 = arith.mulf %15, %18 : vector<8x128xf32>
    %cst_13 = arith.constant 0.0362719856 : f32
    %20 = vector.broadcast %cst_13 : f32 to vector<8x128xf32>
    %21 = arith.mulf %17, %20 : vector<8x128xf32>
    %22 = arith.addf %8, %19 : vector<8x128xf32>
    %23 = arith.addf %10, %21 : vector<8x128xf32>
    %24 = arith.mulf %19, %15 : vector<8x128xf32>
    %25 = arith.addf %11, %24 : vector<8x128xf32>
    %26 = arith.mulf %21, %17 : vector<8x128xf32>
    %27 = arith.addf %12, %26 : vector<8x128xf32>
    %28 = arith.mulf %19, %17 : vector<8x128xf32>
    %29 = arith.addf %13, %28 : vector<8x128xf32>
    %c2 = arith.constant 2 : index
    %c0_14 = arith.constant 0 : index
    %c0_15 = arith.constant 0 : index
    %30 = vector.load %arg2[%c2, %c0_14, %c0_15] : memref<16x8x128xf32, #tpu.memory_space<vmem>>, vector<1x8x128xf32>
    %31 = vector.shape_cast %30 : vector<1x8x128xf32> to vector<8x128xf32>
    %c2_16 = arith.constant 2 : index
    %c0_17 = arith.constant 0 : index
    %c0_18 = arith.constant 0 : index
    %32 = vector.load %arg3[%c2_16, %c0_17, %c0_18] : memref<16x8x128xf32, #tpu.memory_space<vmem>>, vector<1x8x128xf32>
    %33 = vector.shape_cast %32 : vector<1x8x128xf32> to vector<8x128xf32>
    %cst_19 = arith.constant 0.0452982299 : f32
    %34 = vector.broadcast %cst_19 : f32 to vector<8x128xf32>
    %35 = arith.mulf %31, %34 : vector<8x128xf32>
    %cst_20 = arith.constant 0.0452982299 : f32
    %36 = vector.broadcast %cst_20 : f32 to vector<8x128xf32>
    %37 = arith.mulf %33, %36 : vector<8x128xf32>
    %38 = arith.addf %22, %35 : vector<8x128xf32>
    %39 = arith.addf %23, %37 : vector<8x128xf32>
    %40 = arith.mulf %35, %31 : vector<8x128xf32>
    %41 = arith.addf %25, %40 : vector<8x128xf32>
    %42 = arith.mulf %37, %33 : vector<8x128xf32>
    %43 = arith.addf %27, %42 : vector<8x128xf32>
    %44 = arith.mulf %35, %33 : vector<8x128xf32>
    %45 = arith.addf %29, %44 : vector<8x128xf32>
    %c3 = arith.constant 3 : index
    %c0_21 = arith.constant 0 : index
    %c0_22 = arith.constant 0 : index
    %46 = vector.load %arg2[%c3, %c0_21, %c0_22] : memref<16x8x128xf32, #tpu.memory_space<vmem>>, vector<1x8x128xf32>
    %47 = vector.shape_cast %46 : vector<1x8x128xf32> to vector<8x128xf32>
    %c3_23 = arith.constant 3 : index
    %c0_24 = arith.constant 0 : index
    %c0_25 = arith.constant 0 : index
    %48 = vector.load %arg3[%c3_23, %c0_24, %c0_25] : memref<16x8x128xf32, #tpu.memory_space<vmem>>, vector<1x8x128xf32>
    %49 = vector.shape_cast %48 : vector<1x8x128xf32> to vector<8x128xf32>
    %cst_26 = arith.constant 0.0362719856 : f32
    %50 = vector.broadcast %cst_26 : f32 to vector<8x128xf32>
    %51 = arith.mulf %47, %50 : vector<8x128xf32>
    %cst_27 = arith.constant 0.0362719856 : f32
    %52 = vector.broadcast %cst_27 : f32 to vector<8x128xf32>
    %53 = arith.mulf %49, %52 : vector<8x128xf32>
    %54 = arith.addf %38, %51 : vector<8x128xf32>
    %55 = arith.addf %39, %53 : vector<8x128xf32>
    %56 = arith.mulf %51, %47 : vector<8x128xf32>
    %57 = arith.addf %41, %56 : vector<8x128xf32>
    %58 = arith.mulf %53, %49 : vector<8x128xf32>
    %59 = arith.addf %43, %58 : vector<8x128xf32>
    %60 = arith.mulf %51, %49 : vector<8x128xf32>
    %61 = arith.addf %45, %60 : vector<8x128xf32>
    %c4 = arith.constant 4 : index
    %c0_28 = arith.constant 0 : index
    %c0_29 = arith.constant 0 : index
    %62 = vector.load %arg2[%c4, %c0_28, %c0_29] : memref<16x8x128xf32, #tpu.memory_space<vmem>>, vector<1x8x128xf32>
    %63 = vector.shape_cast %62 : vector<1x8x128xf32> to vector<8x128xf32>
    %c4_30 = arith.constant 4 : index
    %c0_31 = arith.constant 0 : index
    %c0_32 = arith.constant 0 : index
    %64 = vector.load %arg3[%c4_30, %c0_31, %c0_32] : memref<16x8x128xf32, #tpu.memory_space<vmem>>, vector<1x8x128xf32>
    %65 = vector.shape_cast %64 : vector<1x8x128xf32> to vector<8x128xf32>
    %cst_33 = arith.constant 0.0362719856 : f32
    %66 = vector.broadcast %cst_33 : f32 to vector<8x128xf32>
    %67 = arith.mulf %63, %66 : vector<8x128xf32>
    %cst_34 = arith.constant 0.0362719856 : f32
    %68 = vector.broadcast %cst_34 : f32 to vector<8x128xf32>
    %69 = arith.mulf %65, %68 : vector<8x128xf32>
    %70 = arith.addf %54, %67 : vector<8x128xf32>
    %71 = arith.addf %55, %69 : vector<8x128xf32>
    %72 = arith.mulf %67, %63 : vector<8x128xf32>
    %73 = arith.addf %57, %72 : vector<8x128xf32>
    %74 = arith.mulf %69, %65 : vector<8x128xf32>
    %75 = arith.addf %59, %74 : vector<8x128xf32>
    %76 = arith.mulf %67, %65 : vector<8x128xf32>
    %77 = arith.addf %61, %76 : vector<8x128xf32>
    %c5 = arith.constant 5 : index
    %c0_35 = arith.constant 0 : index
    %c0_36 = arith.constant 0 : index
    %78 = vector.load %arg2[%c5, %c0_35, %c0_36] : memref<16x8x128xf32, #tpu.memory_space<vmem>>, vector<1x8x128xf32>
    %79 = vector.shape_cast %78 : vector<1x8x128xf32> to vector<8x128xf32>
    %c5_37 = arith.constant 5 : index
    %c0_38 = arith.constant 0 : index
    %c0_39 = arith.constant 0 : index
    %80 = vector.load %arg3[%c5_37, %c0_38, %c0_39] : memref<16x8x128xf32, #tpu.memory_space<vmem>>, vector<1x8x128xf32>
    %81 = vector.shape_cast %80 : vector<1x8x128xf32> to vector<8x128xf32>
    %cst_40 = arith.constant 0.0706481859 : f32
    %82 = vector.broadcast %cst_40 : f32 to vector<8x128xf32>
    %83 = arith.mulf %79, %82 : vector<8x128xf32>
    %cst_41 = arith.constant 0.0706481859 : f32
    %84 = vector.broadcast %cst_41 : f32 to vector<8x128xf32>
    %85 = arith.mulf %81, %84 : vector<8x128xf32>
    %86 = arith.addf %70, %83 : vector<8x128xf32>
    %87 = arith.addf %71, %85 : vector<8x128xf32>
    %88 = arith.mulf %83, %79 : vector<8x128xf32>
    %89 = arith.addf %73, %88 : vector<8x128xf32>
    %90 = arith.mulf %85, %81 : vector<8x128xf32>
    %91 = arith.addf %75, %90 : vector<8x128xf32>
    %92 = arith.mulf %83, %81 : vector<8x128xf32>
    %93 = arith.addf %77, %92 : vector<8x128xf32>
    %c6 = arith.constant 6 : index
    %c0_42 = arith.constant 0 : index
    %c0_43 = arith.constant 0 : index
    %94 = vector.load %arg2[%c6, %c0_42, %c0_43] : memref<16x8x128xf32, #tpu.memory_space<vmem>>, vector<1x8x128xf32>
    %95 = vector.shape_cast %94 : vector<1x8x128xf32> to vector<8x128xf32>
    %c6_44 = arith.constant 6 : index
    %c0_45 = arith.constant 0 : index
    %c0_46 = arith.constant 0 : index
    %96 = vector.load %arg3[%c6_44, %c0_45, %c0_46] : memref<16x8x128xf32, #tpu.memory_space<vmem>>, vector<1x8x128xf32>
    %97 = vector.shape_cast %96 : vector<1x8x128xf32> to vector<8x128xf32>
    %cst_47 = arith.constant 8.822890e-02 : f32
    %98 = vector.broadcast %cst_47 : f32 to vector<8x128xf32>
    %99 = arith.mulf %95, %98 : vector<8x128xf32>
    %cst_48 = arith.constant 8.822890e-02 : f32
    %100 = vector.broadcast %cst_48 : f32 to vector<8x128xf32>
    %101 = arith.mulf %97, %100 : vector<8x128xf32>
    %102 = arith.addf %86, %99 : vector<8x128xf32>
    %103 = arith.addf %87, %101 : vector<8x128xf32>
    %104 = arith.mulf %99, %95 : vector<8x128xf32>
    %105 = arith.addf %89, %104 : vector<8x128xf32>
    %106 = arith.mulf %101, %97 : vector<8x128xf32>
    %107 = arith.addf %91, %106 : vector<8x128xf32>
    %108 = arith.mulf %99, %97 : vector<8x128xf32>
    %109 = arith.addf %93, %108 : vector<8x128xf32>
    %c7 = arith.constant 7 : index
    %c0_49 = arith.constant 0 : index
    %c0_50 = arith.constant 0 : index
    %110 = vector.load %arg2[%c7, %c0_49, %c0_50] : memref<16x8x128xf32, #tpu.memory_space<vmem>>, vector<1x8x128xf32>
    %111 = vector.shape_cast %110 : vector<1x8x128xf32> to vector<8x128xf32>
    %c7_51 = arith.constant 7 : index
    %c0_52 = arith.constant 0 : index
    %c0_53 = arith.constant 0 : index
    %112 = vector.load %arg3[%c7_51, %c0_52, %c0_53] : memref<16x8x128xf32, #tpu.memory_space<vmem>>, vector<1x8x128xf32>
    %113 = vector.shape_cast %112 : vector<1x8x128xf32> to vector<8x128xf32>
    %cst_54 = arith.constant 0.0706481859 : f32
    %114 = vector.broadcast %cst_54 : f32 to vector<8x128xf32>
    %115 = arith.mulf %111, %114 : vector<8x128xf32>
    %cst_55 = arith.constant 0.0706481859 : f32
    %116 = vector.broadcast %cst_55 : f32 to vector<8x128xf32>
    %117 = arith.mulf %113, %116 : vector<8x128xf32>
    %118 = arith.addf %102, %115 : vector<8x128xf32>
    %119 = arith.addf %103, %117 : vector<8x128xf32>
    %120 = arith.mulf %115, %111 : vector<8x128xf32>
    %121 = arith.addf %105, %120 : vector<8x128xf32>
    %122 = arith.mulf %117, %113 : vector<8x128xf32>
    %123 = arith.addf %107, %122 : vector<8x128xf32>
    %124 = arith.mulf %115, %113 : vector<8x128xf32>
    %125 = arith.addf %109, %124 : vector<8x128xf32>
    %c8 = arith.constant 8 : index
    %c0_56 = arith.constant 0 : index
    %c0_57 = arith.constant 0 : index
    %126 = vector.load %arg2[%c8, %c0_56, %c0_57] : memref<16x8x128xf32, #tpu.memory_space<vmem>>, vector<1x8x128xf32>
    %127 = vector.shape_cast %126 : vector<1x8x128xf32> to vector<8x128xf32>
    %c8_58 = arith.constant 8 : index
    %c0_59 = arith.constant 0 : index
    %c0_60 = arith.constant 0 : index
    %128 = vector.load %arg3[%c8_58, %c0_59, %c0_60] : memref<16x8x128xf32, #tpu.memory_space<vmem>>, vector<1x8x128xf32>
    %129 = vector.shape_cast %128 : vector<1x8x128xf32> to vector<8x128xf32>
    %cst_61 = arith.constant 0.0452982299 : f32
    %130 = vector.broadcast %cst_61 : f32 to vector<8x128xf32>
    %131 = arith.mulf %127, %130 : vector<8x128xf32>
    %cst_62 = arith.constant 0.0452982299 : f32
    %132 = vector.broadcast %cst_62 : f32 to vector<8x128xf32>
    %133 = arith.mulf %129, %132 : vector<8x128xf32>
    %134 = arith.addf %118, %131 : vector<8x128xf32>
    %135 = arith.addf %119, %133 : vector<8x128xf32>
    %136 = arith.mulf %131, %127 : vector<8x128xf32>
    %137 = arith.addf %121, %136 : vector<8x128xf32>
    %138 = arith.mulf %133, %129 : vector<8x128xf32>
    %139 = arith.addf %123, %138 : vector<8x128xf32>
    %140 = arith.mulf %131, %129 : vector<8x128xf32>
    %141 = arith.addf %125, %140 : vector<8x128xf32>
    %c9 = arith.constant 9 : index
    %c0_63 = arith.constant 0 : index
    %c0_64 = arith.constant 0 : index
    %142 = vector.load %arg2[%c9, %c0_63, %c0_64] : memref<16x8x128xf32, #tpu.memory_space<vmem>>, vector<1x8x128xf32>
    %143 = vector.shape_cast %142 : vector<1x8x128xf32> to vector<8x128xf32>
    %c9_65 = arith.constant 9 : index
    %c0_66 = arith.constant 0 : index
    %c0_67 = arith.constant 0 : index
    %144 = vector.load %arg3[%c9_65, %c0_66, %c0_67] : memref<16x8x128xf32, #tpu.memory_space<vmem>>, vector<1x8x128xf32>
    %145 = vector.shape_cast %144 : vector<1x8x128xf32> to vector<8x128xf32>
    %cst_68 = arith.constant 8.822890e-02 : f32
    %146 = vector.broadcast %cst_68 : f32 to vector<8x128xf32>
    %147 = arith.mulf %143, %146 : vector<8x128xf32>
    %cst_69 = arith.constant 8.822890e-02 : f32
    %148 = vector.broadcast %cst_69 : f32 to vector<8x128xf32>
    %149 = arith.mulf %145, %148 : vector<8x128xf32>
    %150 = arith.addf %134, %147 : vector<8x128xf32>
    %151 = arith.addf %135, %149 : vector<8x128xf32>
    %152 = arith.mulf %147, %143 : vector<8x128xf32>
    %153 = arith.addf %137, %152 : vector<8x128xf32>
    %154 = arith.mulf %149, %145 : vector<8x128xf32>
    %155 = arith.addf %139, %154 : vector<8x128xf32>
    %156 = arith.mulf %147, %145 : vector<8x128xf32>
    %157 = arith.addf %141, %156 : vector<8x128xf32>
    %c10 = arith.constant 10 : index
    %c0_70 = arith.constant 0 : index
    %c0_71 = arith.constant 0 : index
    %158 = vector.load %arg2[%c10, %c0_70, %c0_71] : memref<16x8x128xf32, #tpu.memory_space<vmem>>, vector<1x8x128xf32>
    %159 = vector.shape_cast %158 : vector<1x8x128xf32> to vector<8x128xf32>
    %c10_72 = arith.constant 10 : index
    %c0_73 = arith.constant 0 : index
    %c0_74 = arith.constant 0 : index
    %160 = vector.load %arg3[%c10_72, %c0_73, %c0_74] : memref<16x8x128xf32, #tpu.memory_space<vmem>>, vector<1x8x128xf32>
    %161 = vector.shape_cast %160 : vector<1x8x128xf32> to vector<8x128xf32>
    %cst_75 = arith.constant 0.110184565 : f32
    %162 = vector.broadcast %cst_75 : f32 to vector<8x128xf32>
    %163 = arith.mulf %159, %162 : vector<8x128xf32>
    %cst_76 = arith.constant 0.110184565 : f32
    %164 = vector.broadcast %cst_76 : f32 to vector<8x128xf32>
    %165 = arith.mulf %161, %164 : vector<8x128xf32>
    %166 = arith.addf %150, %163 : vector<8x128xf32>
    %167 = arith.addf %151, %165 : vector<8x128xf32>
    %168 = arith.mulf %163, %159 : vector<8x128xf32>
    %169 = arith.addf %153, %168 : vector<8x128xf32>
    %170 = arith.mulf %165, %161 : vector<8x128xf32>
    %171 = arith.addf %155, %170 : vector<8x128xf32>
    %172 = arith.mulf %163, %161 : vector<8x128xf32>
    %173 = arith.addf %157, %172 : vector<8x128xf32>
    %c11 = arith.constant 11 : index
    %c0_77 = arith.constant 0 : index
    %c0_78 = arith.constant 0 : index
    %174 = vector.load %arg2[%c11, %c0_77, %c0_78] : memref<16x8x128xf32, #tpu.memory_space<vmem>>, vector<1x8x128xf32>
    %175 = vector.shape_cast %174 : vector<1x8x128xf32> to vector<8x128xf32>
    %c11_79 = arith.constant 11 : index
    %c0_80 = arith.constant 0 : index
    %c0_81 = arith.constant 0 : index
    %176 = vector.load %arg3[%c11_79, %c0_80, %c0_81] : memref<16x8x128xf32, #tpu.memory_space<vmem>>, vector<1x8x128xf32>
    %177 = vector.shape_cast %176 : vector<1x8x128xf32> to vector<8x128xf32>
    %cst_82 = arith.constant 8.822890e-02 : f32
    %178 = vector.broadcast %cst_82 : f32 to vector<8x128xf32>
    %179 = arith.mulf %175, %178 : vector<8x128xf32>
    %cst_83 = arith.constant 8.822890e-02 : f32
    %180 = vector.broadcast %cst_83 : f32 to vector<8x128xf32>
    %181 = arith.mulf %177, %180 : vector<8x128xf32>
    %182 = arith.addf %166, %179 : vector<8x128xf32>
    %183 = arith.addf %167, %181 : vector<8x128xf32>
    %184 = arith.mulf %179, %175 : vector<8x128xf32>
    %185 = arith.addf %169, %184 : vector<8x128xf32>
    %186 = arith.mulf %181, %177 : vector<8x128xf32>
    %187 = arith.addf %171, %186 : vector<8x128xf32>
    %188 = arith.mulf %179, %177 : vector<8x128xf32>
    %189 = arith.addf %173, %188 : vector<8x128xf32>
    %c12 = arith.constant 12 : index
    %c0_84 = arith.constant 0 : index
    %c0_85 = arith.constant 0 : index
    %190 = vector.load %arg2[%c12, %c0_84, %c0_85] : memref<16x8x128xf32, #tpu.memory_space<vmem>>, vector<1x8x128xf32>
    %191 = vector.shape_cast %190 : vector<1x8x128xf32> to vector<8x128xf32>
    %c12_86 = arith.constant 12 : index
    %c0_87 = arith.constant 0 : index
    %c0_88 = arith.constant 0 : index
    %192 = vector.load %arg3[%c12_86, %c0_87, %c0_88] : memref<16x8x128xf32, #tpu.memory_space<vmem>>, vector<1x8x128xf32>
    %193 = vector.shape_cast %192 : vector<1x8x128xf32> to vector<8x128xf32>
    %cst_89 = arith.constant 0.0362719856 : f32
    %194 = vector.broadcast %cst_89 : f32 to vector<8x128xf32>
    %195 = arith.mulf %191, %194 : vector<8x128xf32>
    %cst_90 = arith.constant 0.0362719856 : f32
    %196 = vector.broadcast %cst_90 : f32 to vector<8x128xf32>
    %197 = arith.mulf %193, %196 : vector<8x128xf32>
    %198 = arith.addf %182, %195 : vector<8x128xf32>
    %199 = arith.addf %183, %197 : vector<8x128xf32>
    %200 = arith.mulf %195, %191 : vector<8x128xf32>
    %201 = arith.addf %185, %200 : vector<8x128xf32>
    %202 = arith.mulf %197, %193 : vector<8x128xf32>
    %203 = arith.addf %187, %202 : vector<8x128xf32>
    %204 = arith.mulf %195, %193 : vector<8x128xf32>
    %205 = arith.addf %189, %204 : vector<8x128xf32>
    %c13 = arith.constant 13 : index
    %c0_91 = arith.constant 0 : index
    %c0_92 = arith.constant 0 : index
    %206 = vector.load %arg2[%c13, %c0_91, %c0_92] : memref<16x8x128xf32, #tpu.memory_space<vmem>>, vector<1x8x128xf32>
    %207 = vector.shape_cast %206 : vector<1x8x128xf32> to vector<8x128xf32>
    %c13_93 = arith.constant 13 : index
    %c0_94 = arith.constant 0 : index
    %c0_95 = arith.constant 0 : index
    %208 = vector.load %arg3[%c13_93, %c0_94, %c0_95] : memref<16x8x128xf32, #tpu.memory_space<vmem>>, vector<1x8x128xf32>
    %209 = vector.shape_cast %208 : vector<1x8x128xf32> to vector<8x128xf32>
    %cst_96 = arith.constant 0.0706481859 : f32
    %210 = vector.broadcast %cst_96 : f32 to vector<8x128xf32>
    %211 = arith.mulf %207, %210 : vector<8x128xf32>
    %cst_97 = arith.constant 0.0706481859 : f32
    %212 = vector.broadcast %cst_97 : f32 to vector<8x128xf32>
    %213 = arith.mulf %209, %212 : vector<8x128xf32>
    %214 = arith.addf %198, %211 : vector<8x128xf32>
    %215 = arith.addf %199, %213 : vector<8x128xf32>
    %216 = arith.mulf %211, %207 : vector<8x128xf32>
    %217 = arith.addf %201, %216 : vector<8x128xf32>
    %218 = arith.mulf %213, %209 : vector<8x128xf32>
    %219 = arith.addf %203, %218 : vector<8x128xf32>
    %220 = arith.mulf %211, %209 : vector<8x128xf32>
    %221 = arith.addf %205, %220 : vector<8x128xf32>
    %c14 = arith.constant 14 : index
    %c0_98 = arith.constant 0 : index
    %c0_99 = arith.constant 0 : index
    %222 = vector.load %arg2[%c14, %c0_98, %c0_99] : memref<16x8x128xf32, #tpu.memory_space<vmem>>, vector<1x8x128xf32>
    %223 = vector.shape_cast %222 : vector<1x8x128xf32> to vector<8x128xf32>
    %c14_100 = arith.constant 14 : index
    %c0_101 = arith.constant 0 : index
    %c0_102 = arith.constant 0 : index
    %224 = vector.load %arg3[%c14_100, %c0_101, %c0_102] : memref<16x8x128xf32, #tpu.memory_space<vmem>>, vector<1x8x128xf32>
    %225 = vector.shape_cast %224 : vector<1x8x128xf32> to vector<8x128xf32>
    %cst_103 = arith.constant 8.822890e-02 : f32
    %226 = vector.broadcast %cst_103 : f32 to vector<8x128xf32>
    %227 = arith.mulf %223, %226 : vector<8x128xf32>
    %cst_104 = arith.constant 8.822890e-02 : f32
    %228 = vector.broadcast %cst_104 : f32 to vector<8x128xf32>
    %229 = arith.mulf %225, %228 : vector<8x128xf32>
    %230 = arith.addf %214, %227 : vector<8x128xf32>
    %231 = arith.addf %215, %229 : vector<8x128xf32>
    %232 = arith.mulf %227, %223 : vector<8x128xf32>
    %233 = arith.addf %217, %232 : vector<8x128xf32>
    %234 = arith.mulf %229, %225 : vector<8x128xf32>
    %235 = arith.addf %219, %234 : vector<8x128xf32>
    %236 = arith.mulf %227, %225 : vector<8x128xf32>
    %237 = arith.addf %221, %236 : vector<8x128xf32>
    %c15 = arith.constant 15 : index
    %c0_105 = arith.constant 0 : index
    %c0_106 = arith.constant 0 : index
    %238 = vector.load %arg2[%c15, %c0_105, %c0_106] : memref<16x8x128xf32, #tpu.memory_space<vmem>>, vector<1x8x128xf32>
    %239 = vector.shape_cast %238 : vector<1x8x128xf32> to vector<8x128xf32>
    %c15_107 = arith.constant 15 : index
    %c0_108 = arith.constant 0 : index
    %c0_109 = arith.constant 0 : index
    %240 = vector.load %arg3[%c15_107, %c0_108, %c0_109] : memref<16x8x128xf32, #tpu.memory_space<vmem>>, vector<1x8x128xf32>
    %241 = vector.shape_cast %240 : vector<1x8x128xf32> to vector<8x128xf32>
    %cst_110 = arith.constant 0.0706481859 : f32
    %242 = vector.broadcast %cst_110 : f32 to vector<8x128xf32>
    %243 = arith.mulf %239, %242 : vector<8x128xf32>
    %cst_111 = arith.constant 0.0706481859 : f32
    %244 = vector.broadcast %cst_111 : f32 to vector<8x128xf32>
    %245 = arith.mulf %241, %244 : vector<8x128xf32>
    %246 = arith.addf %230, %243 : vector<8x128xf32>
    %247 = arith.addf %231, %245 : vector<8x128xf32>
    %248 = arith.mulf %243, %239 : vector<8x128xf32>
    %249 = arith.addf %233, %248 : vector<8x128xf32>
    %250 = arith.mulf %245, %241 : vector<8x128xf32>
    %251 = arith.addf %235, %250 : vector<8x128xf32>
    %252 = arith.mulf %243, %241 : vector<8x128xf32>
    %253 = arith.addf %237, %252 : vector<8x128xf32>
    %254 = arith.mulf %246, %246 : vector<8x128xf32>
    %255 = arith.mulf %247, %247 : vector<8x128xf32>
    %256 = arith.mulf %246, %247 : vector<8x128xf32>
    %257 = arith.subf %249, %254 : vector<8x128xf32>
    %258 = arith.subf %251, %255 : vector<8x128xf32>
    %259 = arith.subf %253, %256 : vector<8x128xf32>
    %cst_112 = arith.constant 2.000000e+00 : f32
    %260 = vector.broadcast %cst_112 : f32 to vector<8x128xf32>
    %261 = arith.mulf %260, %256 : vector<8x128xf32>
    %cst_113 = arith.constant 9.99999974E-5 : f32
    %262 = vector.broadcast %cst_113 : f32 to vector<8x128xf32>
    %263 = arith.addf %261, %262 : vector<8x128xf32>
    %cst_114 = arith.constant 2.000000e+00 : f32
    %264 = vector.broadcast %cst_114 : f32 to vector<8x128xf32>
    %265 = arith.mulf %264, %259 : vector<8x128xf32>
    %cst_115 = arith.constant 8.99999984E-4 : f32
    %266 = vector.broadcast %cst_115 : f32 to vector<8x128xf32>
    %267 = arith.addf %265, %266 : vector<8x128xf32>
    %268 = arith.mulf %263, %267 : vector<8x128xf32>
    %269 = arith.addf %254, %255 : vector<8x128xf32>
    %cst_116 = arith.constant 9.99999974E-5 : f32
    %270 = vector.broadcast %cst_116 : f32 to vector<8x128xf32>
    %271 = arith.addf %269, %270 : vector<8x128xf32>
    %272 = arith.addf %257, %258 : vector<8x128xf32>
    %cst_117 = arith.constant 8.99999984E-4 : f32
    %273 = vector.broadcast %cst_117 : f32 to vector<8x128xf32>
    %274 = arith.addf %272, %273 : vector<8x128xf32>
    %275 = arith.mulf %271, %274 : vector<8x128xf32>
    %276 = arith.divf %268, %275 : vector<8x128xf32>
    %c0_118 = arith.constant 0 : index
    %c0_119 = arith.constant 0 : index
    %c0_120 = arith.constant 0 : index
    %277 = vector.load %arg4[%c0_118, %c0_119, %c0_120] : memref<1x1x128xf32, #tpu.memory_space<vmem>>, vector<1x1x128xf32>
    %278 = vector.shape_cast %277 : vector<1x1x128xf32> to vector<1x128xf32>
    %cst_121 = arith.constant dense<0.000000e+00> : vector<128xf32>
    %279 = vector.multi_reduction <add>, %276, %cst_121 [0] : vector<8x128xf32> to vector<128xf32>
    %280 = vector.shape_cast %279 : vector<128xf32> to vector<1x128xf32>
    %281 = arith.addf %278, %280 : vector<1x128xf32>
    %c0_122 = arith.constant 0 : index
    %c0_123 = arith.constant 0 : index
    %c0_124 = arith.constant 0 : index
    %282 = vector.load %arg4[%c0_122, %c0_123, %c0_124] : memref<1x1x128xf32, #tpu.memory_space<vmem>>, vector<1x1x128xf32>
    %283 = vector.shape_cast %282 : vector<1x1x128xf32> to vector<1x128xf32>
    %284 = vector.shape_cast %281 : vector<1x128xf32> to vector<1x1x128xf32>
    tpu.vector_store %arg4[%c0_122, %c0_123, %c0_124], %284 {strides = array<i32>} : memref<1x1x128xf32, #tpu.memory_space<vmem>>, vector<1x1x128xf32>,
    return
  }
  func.func @transform_0(%arg0: i32, %arg1: i32) -> (i32, i32, i32) {
    %c3_i32 = arith.constant 3 : i32
    %0 = arith.muli %arg0, %c3_i32 : i32
    %1 = arith.addi %0, %arg1 : i32
    %c0_i32 = arith.constant 0 : i32
    %c0_i32_0 = arith.constant 0 : i32
    %c0_i32_1 = arith.constant 0 : i32
    return %c0_i32, %1, %c0_i32_0 : i32, i32, i32
  }
  func.func @transform_1(%arg0: i32, %arg1: i32) -> (i32, i32, i32) {
    %c3_i32 = arith.constant 3 : i32
    %0 = arith.muli %arg0, %c3_i32 : i32
    %1 = arith.addi %0, %arg1 : i32
    %c0_i32 = arith.constant 0 : i32
    %c0_i32_0 = arith.constant 0 : i32
    %c0_i32_1 = arith.constant 0 : i32
    return %c0_i32, %1, %c0_i32_0 : i32, i32, i32
  }
  func.func @transform_2(%arg0: i32, %arg1: i32) -> (i32, i32, i32) {
    %c0_i32 = arith.constant 0 : i32
    %c0_i32_0 = arith.constant 0 : i32
    %c0_i32_1 = arith.constant 0 : i32
    return %arg0, %c0_i32, %c0_i32_0 : i32, i32, i32
  }
}

</mosaic_0001>

<bundles_post_ra>
// kernel: custom-call
= control target key start
LH: loop header
LB: loop body
LE: loop exit
PB: predicated region body
PF: predicated region fallthrough
CT: control target
= control target key end

     0   :  { %s6_s0 = inlined_call_operand.vmem [shape: s32[2561], index: 0, kind: output, shape index: {}]  }

// kernel: _lambda_.1
= control target key start
LH: loop header
LB: loop body
LE: loop exit
PB: predicated region body
PF: predicated region fallthrough
CT: control target
= control target key end

     0   :  { %s864_s9 = smov 0   ;;  %s866_s10 = smov 0   ;;  %s1020_s0 = inlined_call_operand.vmem [shape: f32[16,24,128], index: 0, kind: input, shape index: {}]   ;;  %s1021_s1 = inlined_call_operand.vmem [shape: f32[16,24,128], index: 1, kind: input, shape index: {}]   ;;  %s1022_s2 = inlined_call_operand.vmem [shape: f32[1,1,128], index: 2, kind: output, shape index: {}]  }
   0x1   :  { %s868_s11 = smov 0   ;;  %s870_s12 = smov 0  }
   0x2   :  { %s872_s13 = smov 0  }
   0x3 LB: > { %s21_s14 = sadd.s32 1, %s842_s12  ;;  %p42_p1 = scmp.ne.s32.totalorder %s834_s10, %s830_s9  ;;  %s846_s13 = sphi %s872_s13, %s12_s13   ;;  %s842_s12 = sphi %s870_s12, %s1027_s12   ;;  %s838_s11 = sphi %s868_s11, %s1026_s11   ;;  %s834_s10 = sphi %s866_s10, %s1025_s10   ;;  %s830_s9 = sphi %s864_s9, %s1024_s9  }
   0x4   : > { %p22_p0 = scmp.ge.s32.totalorder %s21_s14, 3  ;;  %p43_p2 = scmp.eq.s32.totalorder %s846_s13, 0 }
   0x5   : > { %s35_s17 = sadd.s32 1, %s834_s10  ;;  %p723_p5 = scmp.ge.s32.totalorder %s846_s13, 3 }
   0x6   : > { %s1029_s14 = smov (%p22_p0, %s21_s14), 0  ;;  %p895_p3 = por %p43_p2, %p42_p1 }
   0x7   : > { %s32_s16 = ssub.s32 %s842_s12, %s1029_s14  ;;  %124 = sbr.rel (%p723_p5) target bundleno = 52 (0x34), region = 16 }
   0x8   : > { %p33_p4 = scmp.eq.s32.totalorder %s32_s16, 0 }
   0xa   : > { %s903_s18 = scalar_select %p33_p4, %s834_s10, %s35_s17  }
   0xc   : > { %127 = sbr.rel (!%p895_p3) target bundleno = 32 (0x20), region = 20  ;;  %s129_s19 = sand.u32 (%p895_p3), 1, %s834_s10  }
   0xd   : > { %s725_s20 = sshll.u32 (%p895_p3), %s842_s12, 3  ;;  %s724_s21 = sshll.u32 (%p895_p3), %s129_s19, 7 }
   0xe   : > { %s913_s24 = scalar_lea.vmem (%p895_p3), %s1020_s0, %s725_s20  ;;  %s131_s25 = scalar_lea.vmem (%p895_p3), [#allocation2], %s724_s21 }
   0xf   : > { %v194_v0 = vld [vmem:[%s913_s24] sm:$0xff] (%p895_p3)  ;;  %v196_v1 = vld [vmem:[%s913_s24 + $0x18] sm:$0xff] (%p895_p3)  ;;  %v198_v2 = vld [vmem:[%s913_s24 + $0x30] sm:$0xff] (%p895_p3) }
  0x10   : > { %195 = vst [vmem:[%s131_s25] sm:$0xff] (%p895_p3), %v194_v0  ;;  %v200_v3 = vld [vmem:[%s913_s24 + $0x48] sm:$0xff] (%p895_p3)  ;;  %v202_v4 = vld [vmem:[%s913_s24 + $0x60] sm:$0xff] (%p895_p3)  ;;  %v204_v5 = vld [vmem:[%s913_s24 + $0x78] sm:$0xff] (%p895_p3) }
  0x11   : > { %197 = vst [vmem:[%s131_s25 + $0x8] sm:$0xff] %v196_v1  ;;  %v206_v6 = vld [vmem:[%s913_s24 + $0x90] sm:$0xff]  ;;  %v208_v7 = vld [vmem:[%s913_s24 + $0xa8] sm:$0xff]  ;;  %v210_v8 = vld [vmem:[%s913_s24 + $0xc0] sm:$0xff] }
  0x12   : > { %199 = vst [vmem:[%s131_s25 + $0x10] sm:$0xff] %v198_v2  ;;  %v212_v9 = vld [vmem:[%s913_s24 + $0xd8] sm:$0xff]  ;;  %v214_v10 = vld [vmem:[%s913_s24 + $0xf0] sm:$0xff]  ;;  %v216_v11 = vld [vmem:[%s913_s24 + $0x108] sm:$0xff] }
  0x13   : > { %201 = vst [vmem:[%s131_s25 + $0x18] sm:$0xff] %v200_v3  ;;  %v218_v12 = vld [vmem:[%s913_s24 + $0x120] sm:$0xff]  ;;  %v220_v13 = vld [vmem:[%s913_s24 + $0x138] sm:$0xff]  ;;  %v222_v14 = vld [vmem:[%s913_s24 + $0x150] sm:$0xff] }
  0x14   : > { %203 = vst [vmem:[%s131_s25 + $0x20] sm:$0xff] %v202_v4  ;;  %v224_v15 = vld [vmem:[%s913_s24 + $0x168] sm:$0xff] }
  0x15   : > { %205 = vst [vmem:[%s131_s25 + $0x28] sm:$0xff] %v204_v5 }
  0x16   : > { %207 = vst [vmem:[%s131_s25 + $0x30] sm:$0xff] %v206_v6 }
  0x17   : > { %209 = vst [vmem:[%s131_s25 + $0x38] sm:$0xff] %v208_v7 }
  0x18   : > { %211 = vst [vmem:[%s131_s25 + $0x40] sm:$0xff] %v210_v8 }
  0x19   : > { %213 = vst [vmem:[%s131_s25 + $0x48] sm:$0xff] %v212_v9 }
  0x1a   : > { %215 = vst [vmem:[%s131_s25 + $0x50] sm:$0xff] %v214_v10 }
  0x1b   : > { %217 = vst [vmem:[%s131_s25 + $0x58] sm:$0xff] %v216_v11 }
  0x1c   : > { %219 = vst [vmem:[%s131_s25 + $0x60] sm:$0xff] %v218_v12 }
  0x1d   : > { %221 = vst [vmem:[%s131_s25 + $0x68] sm:$0xff] %v220_v13 }
  0x1e   : > { %223 = vst [vmem:[%s131_s25 + $0x70] sm:$0xff] %v222_v14 }
  0x1f   : > { %225 = vst [vmem:[%s131_s25 + $0x78] sm:$0xff] %v224_v15 }
  0x20 PF: > { %231 = sbr.rel (!%p895_p3) target bundleno = 52 (0x34), region = 58  ;;  %s233_s26 = sand.u32 (%p895_p3), 1, %s834_s10  }
  0x21   : > { %s727_s27 = sshll.u32 (%p895_p3), %s842_s12, 3  ;;  %s726_s28 = sshll.u32 (%p895_p3), %s233_s26, 7 }
  0x22   : > { %s938_s3 = scalar_lea.vmem (%p895_p3), %s1021_s1, %s727_s27  ;;  %s235_s4 = scalar_lea.vmem (%p895_p3), [#allocation3], %s726_s28 }
  0x23   : > { %v298_v16 = vld [vmem:[%s938_s3] sm:$0xff] (%p895_p3)  ;;  %v300_v17 = vld [vmem:[%s938_s3 + $0x18] sm:$0xff] (%p895_p3)  ;;  %v302_v18 = vld [vmem:[%s938_s3 + $0x30] sm:$0xff] (%p895_p3) }
  0x24   : > { %299 = vst [vmem:[%s235_s4] sm:$0xff] (%p895_p3), %v298_v16  ;;  %v304_v19 = vld [vmem:[%s938_s3 + $0x48] sm:$0xff] (%p895_p3)  ;;  %v306_v20 = vld [vmem:[%s938_s3 + $0x60] sm:$0xff] (%p895_p3)  ;;  %v308_v21 = vld [vmem:[%s938_s3 + $0x78] sm:$0xff] (%p895_p3) }
  0x25   : > { %301 = vst [vmem:[%s235_s4 + $0x8] sm:$0xff] %v300_v17  ;;  %v310_v22 = vld [vmem:[%s938_s3 + $0x90] sm:$0xff]  ;;  %v312_v23 = vld [vmem:[%s938_s3 + $0xa8] sm:$0xff]  ;;  %v314_v24 = vld [vmem:[%s938_s3 + $0xc0] sm:$0xff] }
  0x26   : > { %303 = vst [vmem:[%s235_s4 + $0x10] sm:$0xff] %v302_v18  ;;  %v316_v25 = vld [vmem:[%s938_s3 + $0xd8] sm:$0xff]  ;;  %v318_v26 = vld [vmem:[%s938_s3 + $0xf0] sm:$0xff]  ;;  %v320_v27 = vld [vmem:[%s938_s3 + $0x108] sm:$0xff] }
  0x27   : > { %305 = vst [vmem:[%s235_s4 + $0x18] sm:$0xff] %v304_v19  ;;  %v322_v28 = vld [vmem:[%s938_s3 + $0x120] sm:$0xff]  ;;  %v324_v29 = vld [vmem:[%s938_s3 + $0x138] sm:$0xff]  ;;  %v326_v30 = vld [vmem:[%s938_s3 + $0x150] sm:$0xff] }
  0x28   : > { %307 = vst [vmem:[%s235_s4 + $0x20] sm:$0xff] %v306_v20  ;;  %v328_v31 = vld [vmem:[%s938_s3 + $0x168] sm:$0xff] }
  0x29   : > { %309 = vst [vmem:[%s235_s4 + $0x28] sm:$0xff] %v308_v21 }
  0x2a   : > { %311 = vst [vmem:[%s235_s4 + $0x30] sm:$0xff] %v310_v22 }
  0x2b   : > { %313 = vst [vmem:[%s235_s4 + $0x38] sm:$0xff] %v312_v23 }
  0x2c   : > { %315 = vst [vmem:[%s235_s4 + $0x40] sm:$0xff] %v314_v24 }
  0x2d   : > { %317 = vst [vmem:[%s235_s4 + $0x48] sm:$0xff] %v316_v25 }
  0x2e   : > { %319 = vst [vmem:[%s235_s4 + $0x50] sm:$0xff] %v318_v26 }
  0x2f   : > { %321 = vst [vmem:[%s235_s4 + $0x58] sm:$0xff] %v320_v27 }
  0x30   : > { %323 = vst [vmem:[%s235_s4 + $0x60] sm:$0xff] %v322_v28 }
  0x31   : > { %325 = vst [vmem:[%s235_s4 + $0x68] sm:$0xff] %v324_v29 }
  0x32   : > { %327 = vst [vmem:[%s235_s4 + $0x70] sm:$0xff] %v326_v30 }
  0x33   : > { %329 = vst [vmem:[%s235_s4 + $0x78] sm:$0xff] %v328_v31 }
  0x34 PF: > { %p728_p6 = scmp.ge.s32.totalorder %s846_s13, 1  ;;  %p334_p7 = scmp.lt.s32.totalorder %s846_s13, 4 }
  0x36   : > { %p335_p8 = pnand %p728_p6, %p334_p7 }
  0x37   : > { %s341_s5 = sand.u32 (!%p335_p8), 1, %s830_s9   ;;  %p731_p9 = scmp.ne.s32.totalorder (!%p335_p8), %s838_s11, 0 }
  0x38   : > { %338 = sbr.rel (%p335_p8) target bundleno = 153 (0x99), region = 96  ;;  %s729_s6 = sshll.u32 (!%p335_p8), %s341_s5, 7 }
  0x39   : > { %s959_s7 = scalar_lea.vmem (!%p335_p8), [#allocation2], %s729_s6  ;;  %s961_s8 = scalar_lea.vmem (!%p335_p8), [#allocation3], %s729_s6 }
  0x3d   : > { %381 = sbr.rel (%p731_p9) target bundleno = 68 (0x44), region = 108 }
  0x42   : > { %v848_v32 = vmov 0.0  }
  0x43   : > { %382 = vst [vmem:[%s1022_s2] sm:$0x1] %v848_v32 }
  0x44 PF: > { %v383_v33 = vld [vmem:[%s959_s7] sm:$0xff]  ;;  %v732_v35 = vld [vmem:[%s959_s7 + $0x8] sm:$0xff]  ;;  %v734_v39 = vld [vmem:[%s959_s7 + $0x10] sm:$0xff] }
  0x45   : > { %v384_v34 = vld [vmem:[%s961_s8] sm:$0xff]  ;;  %v385_v36 = vmul.f32 0.01862266, %v383_v33  ;;  %v733_v38 = vld [vmem:[%s961_s8 + $0x8] sm:$0xff]  ;;  %v394_v40 = vmul.f32 0.036271986, %v732_v35 }
  0x46   : > { %v386_v37 = vmul.f32 0.01862266, %v384_v34  ;;  %v395_v41 = vmul.f32 0.036271986, %v733_v38  ;;  %v735_v42 = vld [vmem:[%s961_s8 + $0x10] sm:$0xff]  ;;  %v736_v47 = vld [vmem:[%s959_s7 + $0x18] sm:$0xff] }
  0x47   : > { %v387_v43 = vmul.f32 %v385_v36, %v383_v33  ;;  %v389_v45 = vmul.f32 %v385_v36, %v384_v34  ;;  %v408_v46 = vmul.f32 0.04529823, %v734_v39  ;;  %v396_v48 = vadd.f32 %v394_v40, %v385_v36  ;;  %v737_v52 = vld [vmem:[%s961_s8 + $0x18] sm:$0xff]  ;;  %v738_v1 = vld [vmem:[%s959_s7 + $0x20] sm:$0xff]  ;;  %v740_v3 = vld [vmem:[%s959_s7 + $0x28] sm:$0xff] }
  0x48   : > { %v388_v44 = vmul.f32 %v386_v37, %v384_v34  ;;  %v397_v49 = vadd.f32 %v395_v41, %v386_v37  ;;  %v398_v50 = vmul.f32 %v732_v35, %v394_v40  ;;  %v400_v51 = vmul.f32 %v733_v38, %v395_v41  ;;  %v739_v2 = vld [vmem:[%s961_s8 + $0x20] sm:$0xff]  ;;  %v741_v8 = vld [vmem:[%s961_s8 + $0x28] sm:$0xff]  ;;  %v742_v9 = vld [vmem:[%s959_s7 + $0x30] sm:$0xff] }
  0x49   : > { %v402_v53 = vmul.f32 %v733_v38, %v394_v40  ;;  %v409_v54 = vmul.f32 0.04529823, %v735_v42  ;;  %v412_v55 = vmul.f32 %v734_v39, %v408_v46  ;;  %v416_v56 = vmul.f32 %v735_v42, %v408_v46  ;;  %v743_v26 = vld [vmem:[%s961_s8 + $0x30] sm:$0xff]  ;;  %v744_v31 = vld [vmem:[%s959_s7 + $0x38] sm:$0xff] }
  0x4a   : > { %v399_v57 = vadd.f32 %v398_v50, %v387_v43  ;;  %v401_v58 = vadd.f32 %v400_v51, %v388_v44  ;;  %v410_v59 = vadd.f32 %v408_v46, %v396_v48  ;;  %v422_v60 = vmul.f32 0.036271986, %v736_v47  ;;  %v745_v36 = vld [vmem:[%s961_s8 + $0x38] sm:$0xff]  ;;  %v747_v50 = vld [vmem:[%s961_s8 + $0x40] sm:$0xff]  ;;  %v748_v51 = vld [vmem:[%s959_s7 + $0x48] sm:$0xff] }
  0x4b   : > { %v403_v61 = vadd.f32 %v402_v53, %v389_v45  ;;  %v411_v62 = vadd.f32 %v409_v54, %v397_v49  ;;  %v414_v63 = vmul.f32 %v735_v42, %v409_v54  ;;  %v423_v0 = vmul.f32 0.036271986, %v737_v52  ;;  %v746_v49 = vld [vmem:[%s959_s7 + $0x40] sm:$0xff] }
  0x4c   : > { %v413_v4 = vadd.f32 %v412_v55, %v399_v57  ;;  %v424_v5 = vadd.f32 %v422_v60, %v410_v59  ;;  %v426_v6 = vmul.f32 %v736_v47, %v422_v60  ;;  %v430_v7 = vmul.f32 %v737_v52, %v422_v60  ;;  %v750_v57 = vld [vmem:[%s959_s7 + $0x50] sm:$0xff] }
  0x4d   : > { %v415_v10 = vadd.f32 %v414_v63, %v401_v58  ;;  %v417_v11 = vadd.f32 %v416_v56, %v403_v61  ;;  %v425_v12 = vadd.f32 %v423_v0, %v411_v62  ;;  %v428_v13 = vmul.f32 %v737_v52, %v423_v0  ;;  %v749_v56 = vld [vmem:[%s961_s8 + $0x48] sm:$0xff] }
  0x4e   : > { %v427_v14 = vadd.f32 %v426_v6, %v413_v4  ;;  %v436_v15 = vmul.f32 0.036271986, %v738_v1  ;;  %v437_v16 = vmul.f32 0.036271986, %v739_v2  ;;  %v450_v17 = vmul.f32 0.070648186, %v740_v3 }
  0x4f   : > { %v429_v18 = vadd.f32 %v428_v13, %v415_v10  ;;  %v431_v19 = vadd.f32 %v430_v7, %v417_v11  ;;  %v451_v20 = vmul.f32 0.070648186, %v741_v8  ;;  %v464_v21 = vmul.f32 0.0882289, %v742_v9  ;;  %v751_v10 = vld [vmem:[%s961_s8 + $0x50] sm:$0xff] }
  0x50   : > { %v438_v22 = vadd.f32 %v436_v15, %v424_v5  ;;  %v439_v23 = vadd.f32 %v437_v16, %v425_v12  ;;  %v440_v24 = vmul.f32 %v738_v1, %v436_v15  ;;  %v442_v25 = vmul.f32 %v739_v2, %v437_v16 }
  0x51   : > { %v444_v27 = vmul.f32 %v739_v2, %v436_v15  ;;  %v454_v28 = vmul.f32 %v740_v3, %v450_v17  ;;  %v456_v29 = vmul.f32 %v741_v8, %v451_v20  ;;  %v458_v30 = vmul.f32 %v741_v8, %v450_v17  ;;  %v752_v15 = vld [vmem:[%s959_s7 + $0x58] sm:$0xff] }
  0x52   : > { %v441_v32 = vadd.f32 %v440_v24, %v427_v14  ;;  %v443_v33 = vadd.f32 %v442_v25, %v429_v18  ;;  %v452_v34 = vadd.f32 %v450_v17, %v438_v22  ;;  %v453_v35 = vadd.f32 %v451_v20, %v439_v23  ;;  %v753_v20 = vld [vmem:[%s961_s8 + $0x58] sm:$0xff] }
  0x53   : > { %v445_v37 = vadd.f32 %v444_v27, %v431_v19  ;;  %v465_v38 = vmul.f32 0.0882289, %v743_v26  ;;  %v468_v39 = vmul.f32 %v742_v9, %v464_v21  ;;  %v472_v40 = vmul.f32 %v743_v26, %v464_v21 }
  0x54   : > { %v455_v41 = vadd.f32 %v454_v28, %v441_v32  ;;  %v457_v42 = vadd.f32 %v456_v29, %v443_v33  ;;  %v466_v43 = vadd.f32 %v464_v21, %v452_v34  ;;  %v478_v44 = vmul.f32 0.070648186, %v744_v31  ;;  %v754_v33 = vld [vmem:[%s959_s7 + $0x60] sm:$0xff] }
  0x55   : > { %v459_v45 = vadd.f32 %v458_v30, %v445_v37  ;;  %v467_v46 = vadd.f32 %v465_v38, %v453_v35  ;;  %v470_v47 = vmul.f32 %v743_v26, %v465_v38  ;;  %v479_v48 = vmul.f32 0.070648186, %v745_v36  ;;  %v755_v34 = vld [vmem:[%s961_s8 + $0x60] sm:$0xff]  ;;  %v756_v35 = vld [vmem:[%s959_s7 + $0x68] sm:$0xff] }
  0x56   : > { %v469_v52 = vadd.f32 %v468_v39, %v455_v41  ;;  %v480_v53 = vadd.f32 %v478_v44, %v466_v43  ;;  %v482_v54 = vmul.f32 %v744_v31, %v478_v44  ;;  %v486_v55 = vmul.f32 %v745_v36, %v478_v44  ;;  %v758_v41 = vld [vmem:[%s959_s7 + $0x70] sm:$0xff] }
  0x57   : > { %v471_v58 = vadd.f32 %v470_v47, %v457_v42  ;;  %v473_v59 = vadd.f32 %v472_v40, %v459_v45  ;;  %v481_v60 = vadd.f32 %v479_v48, %v467_v46  ;;  %v484_v61 = vmul.f32 %v745_v36, %v479_v48  ;;  %v757_v40 = vld [vmem:[%s961_s8 + $0x68] sm:$0xff] }
  0x58   : > { %v483_v62 = vadd.f32 %v482_v54, %v469_v52  ;;  %v492_v63 = vmul.f32 0.04529823, %v746_v49  ;;  %v493_v0 = vmul.f32 0.04529823, %v747_v50  ;;  %v506_v1 = vmul.f32 0.0882289, %v748_v51 }
  0x59   : > { %v485_v2 = vadd.f32 %v484_v61, %v471_v58  ;;  %v487_v3 = vadd.f32 %v486_v55, %v473_v59  ;;  %v507_v4 = vmul.f32 0.0882289, %v749_v56  ;;  %v520_v5 = vmul.f32 0.110184565, %v750_v57  ;;  %v759_v58 = vld [vmem:[%s961_s8 + $0x70] sm:$0xff] }
  0x5a   : > { %v494_v6 = vadd.f32 %v492_v63, %v480_v53  ;;  %v495_v7 = vadd.f32 %v493_v0, %v481_v60  ;;  %v496_v8 = vmul.f32 %v746_v49, %v492_v63  ;;  %v498_v9 = vmul.f32 %v747_v50, %v493_v0 }
  0x5b   : > { %v500_v11 = vmul.f32 %v747_v50, %v492_v63  ;;  %v510_v12 = vmul.f32 %v748_v51, %v506_v1  ;;  %v512_v13 = vmul.f32 %v749_v56, %v507_v4  ;;  %v514_v14 = vmul.f32 %v749_v56, %v506_v1 }
  0x5c   : > { %v497_v16 = vadd.f32 %v496_v8, %v483_v62  ;;  %v499_v17 = vadd.f32 %v498_v9, %v485_v2  ;;  %v508_v18 = vadd.f32 %v506_v1, %v494_v6  ;;  %v509_v19 = vadd.f32 %v507_v4, %v495_v7  ;;  %v760_v62 = vld [vmem:[%s959_s7 + $0x78] sm:$0xff] }
  0x5d   : > { %v501_v21 = vadd.f32 %v500_v11, %v487_v3  ;;  %v521_v22 = vmul.f32 0.110184565, %v751_v10  ;;  %v524_v23 = vmul.f32 %v750_v57, %v520_v5  ;;  %v528_v24 = vmul.f32 %v751_v10, %v520_v5  ;;  %v761_v3 = vld [vmem:[%s961_s8 + $0x78] sm:$0xff] }
  0x5e   : > { %v511_v25 = vadd.f32 %v510_v12, %v497_v16  ;;  %v513_v26 = vadd.f32 %v512_v13, %v499_v17  ;;  %v522_v27 = vadd.f32 %v520_v5, %v508_v18  ;;  %v534_v28 = vmul.f32 0.0882289, %v752_v15 }
  0x5f   : > { %v515_v29 = vadd.f32 %v514_v14, %v501_v21  ;;  %v523_v30 = vadd.f32 %v521_v22, %v509_v19  ;;  %v526_v31 = vmul.f32 %v751_v10, %v521_v22  ;;  %v535_v32 = vmul.f32 0.0882289, %v753_v20 }
  0x60   : > { %v525_v36 = vadd.f32 %v524_v23, %v511_v25  ;;  %v536_v37 = vadd.f32 %v534_v28, %v522_v27  ;;  %v538_v38 = vmul.f32 %v752_v15, %v534_v28  ;;  %v542_v39 = vmul.f32 %v753_v20, %v534_v28 }
  0x61   : > { %v527_v42 = vadd.f32 %v526_v31, %v513_v26  ;;  %v529_v43 = vadd.f32 %v528_v24, %v515_v29  ;;  %v537_v44 = vadd.f32 %v535_v32, %v523_v30  ;;  %v540_v45 = vmul.f32 %v753_v20, %v535_v32 }
  0x62   : > { %v539_v46 = vadd.f32 %v538_v38, %v525_v36  ;;  %v548_v47 = vmul.f32 0.036271986, %v754_v33  ;;  %v549_v48 = vmul.f32 0.036271986, %v755_v34  ;;  %v562_v49 = vmul.f32 0.070648186, %v756_v35 }
  0x63   : > { %v541_v50 = vadd.f32 %v540_v45, %v527_v42  ;;  %v543_v51 = vadd.f32 %v542_v39, %v529_v43  ;;  %v563_v52 = vmul.f32 0.070648186, %v757_v40  ;;  %v576_v53 = vmul.f32 0.0882289, %v758_v41 }
  0x64   : > { %v550_v54 = vadd.f32 %v548_v47, %v536_v37  ;;  %v551_v55 = vadd.f32 %v549_v48, %v537_v44  ;;  %v552_v56 = vmul.f32 %v754_v33, %v548_v47  ;;  %v554_v57 = vmul.f32 %v755_v34, %v549_v48 }
  0x65   : > { %v556_v59 = vmul.f32 %v755_v34, %v548_v47  ;;  %v566_v60 = vmul.f32 %v756_v35, %v562_v49  ;;  %v568_v61 = vmul.f32 %v757_v40, %v563_v52  ;;  %v570_v5 = vmul.f32 %v757_v40, %v562_v49 }
  0x66   : > { %v553_v63 = vadd.f32 %v552_v56, %v539_v46  ;;  %v555_v0 = vadd.f32 %v554_v57, %v541_v50  ;;  %v564_v1 = vadd.f32 %v562_v49, %v550_v54  ;;  %v565_v2 = vadd.f32 %v563_v52, %v551_v55 }
  0x67   : > { %v557_v4 = vadd.f32 %v556_v59, %v543_v51  ;;  %v577_v6 = vmul.f32 0.0882289, %v759_v58  ;;  %v580_v7 = vmul.f32 %v758_v41, %v576_v53  ;;  %v590_v11 = vmul.f32 0.070648186, %v760_v62 }
  0x68   : > { %v567_v8 = vadd.f32 %v566_v60, %v553_v63  ;;  %v569_v9 = vadd.f32 %v568_v61, %v555_v0  ;;  %v578_v10 = vadd.f32 %v576_v53, %v564_v1  ;;  %v591_v14 = vmul.f32 0.070648186, %v761_v3  ;;  %v631_v60 = vld [vmem:[%s1022_s2] sm:$0x1] }
  0x69   : > { %v579_v12 = vadd.f32 %v577_v6, %v565_v2  ;;  %v582_v13 = vmul.f32 %v759_v58, %v577_v6  ;;  %v584_v16 = vmul.f32 %v759_v58, %v576_v53  ;;  %v594_v18 = vmul.f32 %v760_v62, %v590_v11 }
  0x6a   : > { %v581_v15 = vadd.f32 %v580_v7, %v567_v8  ;;  %v592_v17 = vadd.f32 %v590_v11, %v578_v10  ;;  %v571_v19 = vadd.f32 %v570_v5, %v557_v4  ;;  %v596_v22 = vmul.f32 %v761_v3, %v591_v14 }
  0x6b   : > { %v583_v20 = vadd.f32 %v582_v13, %v569_v9  ;;  %v593_v21 = vadd.f32 %v591_v14, %v579_v12  ;;  %v598_v29 = vmul.f32 %v761_v3, %v590_v11 }
  0x6c   : > { %v595_v23 = vadd.f32 %v594_v18, %v581_v15  ;;  %v600_v24 = vmul.f32 %v592_v17, %v592_v17  ;;  %v585_v28 = vadd.f32 %v584_v16, %v571_v19 }
  0x6d   : > { %v597_v25 = vadd.f32 %v596_v22, %v583_v20  ;;  %v601_v26 = vmul.f32 %v593_v21, %v593_v21  ;;  %v602_v35 = vmul.f32 %v593_v21, %v592_v17 }
  0x6e   : > { %v603_v27 = vsub.f32 %v595_v23, %v600_v24  ;;  %v599_v34 = vadd.f32 %v598_v29, %v585_v28 }
  0x6f   : > { %v604_v30 = vsub.f32 %v597_v25, %v601_v26  ;;  %v611_v31 = vadd.f32 %v601_v26, %v600_v24  ;;  %v606_v39 = vmul.f32 2.0, %v602_v35 }
  0x70   : > { %v605_v38 = vsub.f32 %v599_v34, %v602_v35 }
  0x71   : > { %v612_v32 = vadd.f32 0.0001, %v611_v31  ;;  %v613_v33 = vadd.f32 %v604_v30, %v603_v27  ;;  %v607_v43 = vadd.f32 0.0001, %v606_v39 }
  0x72   : > { %v608_v40 = vmul.f32 2.0, %v605_v38 }
  0x73   : > { %v614_v36 = vadd.f32 0.0009, %v613_v33 }
  0x74   : > { %v609_v44 = vadd.f32 0.0009, %v608_v40 }
  0x75   : > { %v615_v37 = vmul.f32 %v614_v36, %v612_v32 }
  0x76   : > { %v610_v50 = vmul.f32 %v609_v44, %v607_v43 }
  0x77   : > { %806 = vrcp.f32 %v615_v37  ;;  %v627_v45 = vand.u32 2147483648, %v615_v37  ;;  %vm621_vm0 = vweird.f32 %v615_v37  ;;  %v625_v47 = vand.u32 2147483647, %v615_v37 }
  0x79   : > { %v628_v49 = vor.u32 1.1754944e-38, %v627_v45  ;;  %vm626_vm3 = vcmp.eq.f32.partialorder %v625_v47, 8.507059e+37 }
  0x7d   : > { %v807_v41 = vpop.eup %806 }
  0x7e   : > { %v617_v42 = vmul.f32 %v807_v41, %v615_v37  ;;  %vm622_vm1 = vweird.f32 %v807_v41 }
  0x7f   : > { %vm623_vm2 = vmor %vm621_vm0, %vm622_vm1 }
  0x80   : > { %v618_v46 = vsub.f32 1.0, %v617_v42 }
  0x82   : > { %v619_v48 = vmul.f32 %v807_v41, %v618_v46 }
  0x84   : > { %v620_v51 = vadd.f32 %v807_v41, %v619_v48 }
  0x86   : > { %v624_v52 = vsel %vm623_vm2, %v807_v41, %v620_v51 }
  0x87   : > { %v629_v53 = vsel %vm626_vm3, %v628_v49, %v624_v52 }
  0x88   : > { %v630_v54 = vmul.f32 %v629_v53, %v610_v50 }
  0x8a   : > { %v632_v55 = vrot.slane %v630_v54, 4 }
  0x8c   : > { %v633_v56 = vadd.f32 %v632_v55, %v630_v54 }
  0x8e   : > { %v634_v57 = vrot.slane %v633_v56, 2 }
  0x90   : > { %v635_v58 = vadd.f32 %v634_v57, %v633_v56 }
  0x92   : > { %v636_v59 = vrot.slane %v635_v58, 1 }
  0x94   : > { %v637_v61 = vadd.f32 %v636_v59, %v635_v58 }
  0x96   : > { %v638_v62 = vadd.f32 %v637_v61, %v631_v60 }
  0x98   : > { %639 = vst [vmem:[%s1022_s2] sm:$0x1] %v638_v62 }
  0x99 PF: > { %s12_s13 = sadd.s32 1, %s846_s13   ;;  %s1024_s9 = smov %s834_s10 }
  0x9a   : > { %p9_p10 = scmp.ge.s32.totalorder %s12_s13, 5   ;;  %s1025_s10 = smov %s903_s18 }
  0x9b   : > { %s1026_s11 = smov %s842_s12  ;;  %s1027_s12 = smov %s1029_s14 }
  0x9c   :  { %11 = sbr.rel (!%p9_p10) target bundleno = 3 (0x3), region = 181 }

</bundles_post_ra>
